<compile_context>
chip_gen: v7x
topology: tpu7x:2x2x1
jax: 0.10.0
libtpu: 0.0.40
codegen_flags: <defaults>
</compile_context>

<pallas_src>
import math

import jax
import jax.numpy as jnp
from jax.experimental import pallas as pl
from jax.experimental.pallas import tpu as pltpu


# ------------------------------ Pallas kernel -------------------------------

def _make_downsample_kernel(ho, wo, c):
    """3x3 / stride-2 / pad-1 conv on one phase-split padded image block."""
    hw = ho * wo

    def kernel(x_ref, w_ref, b_ref, o_ref):
        # x_ref: (1, Ho+1, 2, Wo+1, 2*C)  phase-split zero-padded input, f32
        #        x_ref[0, i, p, j, q*C + ci] == x_padded[2i+p, 2j+q, ci]
        # w_ref: (9*C, C)  fused per-tap weights, bf16
        # b_ref: (1, C)    bias, f32
        # o_ref: (1, Ho*Wo, C)
        taps = []
        for kh in range(3):
            roff, ph = divmod(kh, 2)        # padded row 2*oh+kh = 2*(oh+roff)+ph
            for kw in range(3):
                coff, pw = divmod(kw, 2)    # padded col 2*ow+kw = 2*(ow+coff)+pw
                t = x_ref[0, roff:roff + ho, ph, coff:coff + wo,
                          pw * c:(pw + 1) * c]            # (Ho, Wo, C)
                taps.append(t.reshape(hw, c).astype(jnp.bfloat16))
        patches = jnp.concatenate(taps, axis=-1)          # (Ho*Wo, 9*C) bf16
        acc = jnp.dot(patches, w_ref[...],
                      preferred_element_type=jnp.float32)  # (Ho*Wo, C) f32
        acc = acc + b_ref[...].astype(jnp.float32)
        o_ref[0] = acc.astype(o_ref.dtype)

    return kernel


# ------------------------------ host wrappers --------------------------------

def prepare_downsample_params(w_oihw, b):
    """PyTorch OIHW (Cout,Cin,3,3) weight -> fused (9*Cin, Cout) bf16, bias -> (1,Cout) f32.

    Done once at build time (not per forward call)."""
    cout, cin, kh, kw = w_oihw.shape
    assert (kh, kw) == (3, 3)
    w_fused = jnp.transpose(w_oihw, (2, 3, 1, 0)).reshape(9 * cin, cout)
    return w_fused.astype(jnp.bfloat16), b.reshape(1, cout).astype(jnp.float32)


def downsample(x_nchw, w_fused, b2):
    """Forward of Downsample: Conv2d(C, C, 3, stride=2, padding=1).  x: NCHW f32."""
    n, c, h, w = x_nchw.shape
    assert h % 2 == 0 and w % 2 == 0, "stride-2 path assumes even H, W"
    ho, wo = h // 2, w // 2
    # Demo kernel is tuned for lane-dense channels and sublane-aligned width.
    assert c % 128 == 0 and wo % 8 == 0, (
        "demo kernel assumes C % 128 == 0 (lane-dense IO) and (W//2) % 8 == 0")
    # TODO(synk): for real SD latent sizes, tile Ho ('parallel' grid axis) and the
    # 9*C contraction ('arbitrary' axis + f32 VMEM accumulator) and set
    # vmem_limit_bytes explicitly (v7x has only 64 MiB VMEM).

    x = jnp.transpose(x_nchw, (0, 2, 3, 1))                 # NCHW -> NHWC
    xp = jnp.pad(x, ((0, 0), (1, 1), (1, 1), (0, 0)))       # (N, 2Ho+2, 2Wo+2, C)
    # Free row-major reshape (no data movement): split H and W into
    # (pair, phase), merge the W phase into channels.
    xr = xp.reshape(n, ho + 1, 2, wo + 1, 2 * c)

    out = pl.pallas_call(
        _make_downsample_kernel(ho, wo, c),
        out_shape=jax.ShapeDtypeStruct((n, ho * wo, c), x.dtype),
        grid=(n,),
        in_specs=[
            pl.BlockSpec((1, ho + 1, 2, wo + 1, 2 * c),
                         lambda i: (i, 0, 0, 0, 0)),
            pl.BlockSpec((9 * c, c), lambda i: (0, 0)),
            pl.BlockSpec((1, c), lambda i: (0, 0)),
        ],
        out_specs=pl.BlockSpec((1, ho * wo, c), lambda i: (i, 0, 0)),
        compiler_params=pltpu.CompilerParams(
            dimension_semantics=("parallel",)),
    )(xr, w_fused, b2)

    out = out.reshape(n, ho, wo, c)
    return jnp.transpose(out, (0, 3, 1, 2))                 # NHWC -> NCHW


# ---------------------------------- main -------------------------------------

if __name__ == "__main__":
    N, C, H, W = 2, 128, 16, 16          # small, TPU-lane-aligned shapes

    key = jax.random.PRNGKey(0)
    k_w, k_b, k_x = jax.random.split(key, 3)
    s = 1.0 / math.sqrt(C * 3 * 3)       # PyTorch Conv2d default init range
    w = jax.random.uniform(k_w, (C, C, 3, 3), jnp.float32, -s, s)   # OIHW
    b = jax.random.uniform(k_b, (C,), jnp.float32, -s, s)
    x = jax.random.normal(k_x, (N, C, H, W), jnp.float32)           # NCHW

    w_fused, b2 = prepare_downsample_params(w, b)

    fwd = jax.jit(downsample)
    y = fwd(x, w_fused, b2)
    jax.block_until_ready(y)
    assert y.shape == (N, C, H // 2, W // 2), y.shape
    assert bool(jnp.all(jnp.isfinite(y)))

    # f32 reference (kernel uses bf16 MXU operands with f32 accumulation,
    # so allow small drift).
    ref = jax.lax.conv_general_dilated(
        x, w, window_strides=(2, 2), padding=((1, 1), (1, 1)),
        dimension_numbers=("NCHW", "OIHW", "NCHW")) + b[None, :, None, None]
    max_err = float(jnp.max(jnp.abs(y - ref)))
    assert max_err < 5e-2, f"max abs error vs reference conv: {max_err}"

    print("KERNEL_OK")
</pallas_src>

<mosaic_0001>
module attributes {stable_mosaic.version = 11 : i64} {
  func.func @kernel(%arg0: i32, %arg1: memref<1x9x2x9x256xf32, #tpu.memory_space<vmem>>, %arg2: memref<1152x128xbf16, #tpu.memory_space<vmem>>, %arg3: memref<1x128xf32, #tpu.memory_space<vmem>>, %arg4: memref<1x64x128xf32, #tpu.memory_space<vmem>>) attributes {dimension_semantics = [#tpu.dimension_semantics<parallel>], iteration_bounds = array<i64: 2>, scalar_prefetch = 0 : i64, scratch_operands = 0 : i64, tpu.core_type = #tpu.core_type<tc>, window_params = [{transform_indices = @transform_0, window_bounds = array<i64: 1, 9, 2, 9, 256>}, {pipeline_mode = #tpu.pipeline_mode<synchronous>, transform_indices = @transform_1, window_bounds = array<i64: 1152, 128>}, {pipeline_mode = #tpu.pipeline_mode<synchronous>, transform_indices = @transform_2, window_bounds = array<i64: 1, 128>}, {transform_indices = @transform_3, window_bounds = array<i64: 1, 64, 128>}]} {
    %c0 = arith.constant 0 : index
    %c0_0 = arith.constant 0 : index
    %c0_1 = arith.constant 0 : index
    %c0_2 = arith.constant 0 : index
    %c0_3 = arith.constant 0 : index
    %0 = vector.load %arg1[%c0, %c0_0, %c0_1, %c0_2, %c0_3] : memref<1x9x2x9x256xf32, #tpu.memory_space<vmem>>, vector<1x8x1x8x128xf32>
    %1 = vector.shape_cast %0 : vector<1x8x1x8x128xf32> to vector<8x8x128xf32>
    %2 = vector.shape_cast %1 : vector<8x8x128xf32> to vector<64x128xf32>
    %3 = arith.truncf %2 : vector<64x128xf32> to vector<64x128xbf16>
    %c0_4 = arith.constant 0 : index
    %c0_5 = arith.constant 0 : index
    %c0_6 = arith.constant 0 : index
    %c0_7 = arith.constant 0 : index
    %c128 = arith.constant 128 : index
    %4 = vector.load %arg1[%c0_4, %c0_5, %c0_6, %c0_7, %c128] : memref<1x9x2x9x256xf32, #tpu.memory_space<vmem>>, vector<1x8x1x8x128xf32>
    %5 = vector.shape_cast %4 : vector<1x8x1x8x128xf32> to vector<8x8x128xf32>
    %6 = vector.shape_cast %5 : vector<8x8x128xf32> to vector<64x128xf32>
    %7 = arith.truncf %6 : vector<64x128xf32> to vector<64x128xbf16>
    %c0_8 = arith.constant 0 : index
    %c0_9 = arith.constant 0 : index
    %c0_10 = arith.constant 0 : index
    %c1 = arith.constant 1 : index
    %c0_11 = arith.constant 0 : index
    %8 = vector.load %arg1[%c0_8, %c0_9, %c0_10, %c1, %c0_11] : memref<1x9x2x9x256xf32, #tpu.memory_space<vmem>>, vector<1x8x1x8x128xf32>
    %9 = vector.shape_cast %8 : vector<1x8x1x8x128xf32> to vector<8x8x128xf32>
    %10 = vector.shape_cast %9 : vector<8x8x128xf32> to vector<64x128xf32>
    %11 = arith.truncf %10 : vector<64x128xf32> to vector<64x128xbf16>
    %c0_12 = arith.constant 0 : index
    %c0_13 = arith.constant 0 : index
    %c1_14 = arith.constant 1 : index
    %c0_15 = arith.constant 0 : index
    %c0_16 = arith.constant 0 : index
    %12 = vector.load %arg1[%c0_12, %c0_13, %c1_14, %c0_15, %c0_16] : memref<1x9x2x9x256xf32, #tpu.memory_space<vmem>>, vector<1x8x1x8x128xf32>
    %13 = vector.shape_cast %12 : vector<1x8x1x8x128xf32> to vector<8x8x128xf32>
    %14 = vector.shape_cast %13 : vector<8x8x128xf32> to vector<64x128xf32>
    %15 = arith.truncf %14 : vector<64x128xf32> to vector<64x128xbf16>
    %c0_17 = arith.constant 0 : index
    %c0_18 = arith.constant 0 : index
    %c1_19 = arith.constant 1 : index
    %c0_20 = arith.constant 0 : index
    %c128_21 = arith.constant 128 : index
    %16 = vector.load %arg1[%c0_17, %c0_18, %c1_19, %c0_20, %c128_21] : memref<1x9x2x9x256xf32, #tpu.memory_space<vmem>>, vector<1x8x1x8x128xf32>
    %17 = vector.shape_cast %16 : vector<1x8x1x8x128xf32> to vector<8x8x128xf32>
    %18 = vector.shape_cast %17 : vector<8x8x128xf32> to vector<64x128xf32>
    %19 = arith.truncf %18 : vector<64x128xf32> to vector<64x128xbf16>
    %c0_22 = arith.constant 0 : index
    %c0_23 = arith.constant 0 : index
    %c1_24 = arith.constant 1 : index
    %c1_25 = arith.constant 1 : index
    %c0_26 = arith.constant 0 : index
    %20 = vector.load %arg1[%c0_22, %c0_23, %c1_24, %c1_25, %c0_26] : memref<1x9x2x9x256xf32, #tpu.memory_space<vmem>>, vector<1x8x1x8x128xf32>
    %21 = vector.shape_cast %20 : vector<1x8x1x8x128xf32> to vector<8x8x128xf32>
    %22 = vector.shape_cast %21 : vector<8x8x128xf32> to vector<64x128xf32>
    %23 = arith.truncf %22 : vector<64x128xf32> to vector<64x128xbf16>
    %c0_27 = arith.constant 0 : index
    %c1_28 = arith.constant 1 : index
    %c0_29 = arith.constant 0 : index
    %c0_30 = arith.constant 0 : index
    %c0_31 = arith.constant 0 : index
    %24 = vector.load %arg1[%c0_27, %c1_28, %c0_29, %c0_30, %c0_31] : memref<1x9x2x9x256xf32, #tpu.memory_space<vmem>>, vector<1x8x1x8x128xf32>
    %25 = vector.shape_cast %24 : vector<1x8x1x8x128xf32> to vector<8x8x128xf32>
    %26 = vector.shape_cast %25 : vector<8x8x128xf32> to vector<64x128xf32>
    %27 = arith.truncf %26 : vector<64x128xf32> to vector<64x128xbf16>
    %c0_32 = arith.constant 0 : index
    %c1_33 = arith.constant 1 : index
    %c0_34 = arith.constant 0 : index
    %c0_35 = arith.constant 0 : index
    %c128_36 = arith.constant 128 : index
    %28 = vector.load %arg1[%c0_32, %c1_33, %c0_34, %c0_35, %c128_36] : memref<1x9x2x9x256xf32, #tpu.memory_space<vmem>>, vector<1x8x1x8x128xf32>
    %29 = vector.shape_cast %28 : vector<1x8x1x8x128xf32> to vector<8x8x128xf32>
    %30 = vector.shape_cast %29 : vector<8x8x128xf32> to vector<64x128xf32>
    %31 = arith.truncf %30 : vector<64x128xf32> to vector<64x128xbf16>
    %c0_37 = arith.constant 0 : index
    %c1_38 = arith.constant 1 : index
    %c0_39 = arith.constant 0 : index
    %c1_40 = arith.constant 1 : index
    %c0_41 = arith.constant 0 : index
    %32 = vector.load %arg1[%c0_37, %c1_38, %c0_39, %c1_40, %c0_41] : memref<1x9x2x9x256xf32, #tpu.memory_space<vmem>>, vector<1x8x1x8x128xf32>
    %33 = vector.shape_cast %32 : vector<1x8x1x8x128xf32> to vector<8x8x128xf32>
    %34 = vector.shape_cast %33 : vector<8x8x128xf32> to vector<64x128xf32>
    %35 = arith.truncf %34 : vector<64x128xf32> to vector<64x128xbf16>
    %36 = tpu.concatenate %3, %7, %11, %15, %19, %23, %27, %31, %35 in 1 : vector<64x128xbf16>, vector<64x128xbf16>, vector<64x128xbf16>, vector<64x128xbf16>, vector<64x128xbf16>, vector<64x128xbf16>, vector<64x128xbf16>, vector<64x128xbf16>, vector<64x128xbf16> -> vector<64x1152xbf16>
    %c0_42 = arith.constant 0 : index
    %c0_43 = arith.constant 0 : index
    %37 = vector.load %arg2[%c0_42, %c0_43] : memref<1152x128xbf16, #tpu.memory_space<vmem>>, vector<1152x128xbf16>
    %cst = arith.constant dense<0.000000e+00> : vector<64x128xf32>
    %38 = tpu.matmul %36, %37, %cst {dimension_numbers = #tpu.dot_dimension_numbers<[1], [0], [0], [1], [0, 0, 1, 1], [], []>} : vector<64x1152xbf16>, vector<1152x128xbf16>, vector<64x128xf32> -> vector<64x128xf32>
    %c0_44 = arith.constant 0 : index
    %c0_45 = arith.constant 0 : index
    %39 = vector.load %arg3[%c0_44, %c0_45] : memref<1x128xf32, #tpu.memory_space<vmem>>, vector<1x128xf32>
    %40 = vector.broadcast %39 : vector<1x128xf32> to vector<64x128xf32>
    %41 = arith.addf %38, %40 : vector<64x128xf32>
    %c0_46 = arith.constant 0 : index
    %c0_47 = arith.constant 0 : index
    %c0_48 = arith.constant 0 : index
    %42 = vector.load %arg4[%c0_46, %c0_47, %c0_48] : memref<1x64x128xf32, #tpu.memory_space<vmem>>, vector<1x64x128xf32>
    %43 = vector.shape_cast %42 : vector<1x64x128xf32> to vector<64x128xf32>
    %44 = vector.shape_cast %41 : vector<64x128xf32> to vector<1x64x128xf32>
    tpu.vector_store %arg4[%c0_46, %c0_47, %c0_48], %44 {strides = array<i32>} : memref<1x64x128xf32, #tpu.memory_space<vmem>>, vector<1x64x128xf32>,
    return
  }
  func.func @transform_0(%arg0: i32) -> (i32, i32, i32, i32, i32) {
    %c0_i32 = arith.constant 0 : i32
    %c0_i32_0 = arith.constant 0 : i32
    %c0_i32_1 = arith.constant 0 : i32
    %c0_i32_2 = arith.constant 0 : i32
    %c0_i32_3 = arith.constant 0 : i32
    return %arg0, %c0_i32, %c0_i32_0, %c0_i32_1, %c0_i32_2 : i32, i32, i32, i32, i32
  }
  func.func @transform_1(%arg0: i32) -> (i32, i32) {
    %c0_i32 = arith.constant 0 : i32
    %c0_i32_0 = arith.constant 0 : i32
    %c0_i32_1 = arith.constant 0 : i32
    return %c0_i32, %c0_i32_0 : i32, i32
  }
  func.func @transform_2(%arg0: i32) -> (i32, i32) {
    %c0_i32 = arith.constant 0 : i32
    %c0_i32_0 = arith.constant 0 : i32
    %c0_i32_1 = arith.constant 0 : i32
    return %c0_i32, %c0_i32_0 : i32, i32
  }
  func.func @transform_3(%arg0: i32) -> (i32, i32, i32) {
    %c0_i32 = arith.constant 0 : i32
    %c0_i32_0 = arith.constant 0 : i32
    %c0_i32_1 = arith.constant 0 : i32
    return %arg0, %c0_i32, %c0_i32_0 : i32, i32, i32
  }
}

</mosaic_0001>

<bundles_post_ra>
// kernel: downsample.1
= control target key start
LH: loop header
LB: loop body
LE: loop exit
PB: predicated region body
PF: predicated region fallthrough
CT: control target
= control target key end

     0   :  { %8 = vsyncpa [#allocation3], 0  ;;  %s2514_s0 = inlined_call_operand.vmem [shape: f32[2,9,2,9,256], index: 0, kind: input, shape index: {}]   ;;  %s2515_s1 = inlined_call_operand.vmem [shape: bf16[1152,128], index: 1, kind: input, shape index: {}]   ;;  %s2516_s2 = inlined_call_operand.vmem [shape: f32[1,128], index: 2, kind: input, shape index: {}]   ;;  %s2517_s3 = inlined_call_operand.hbm [shape: f32[2,64,128], index: 3, kind: output, shape index: {}]  }
   0x1   :  { %10 = vsyncpa [#allocation3 + $0x1], 0  ;;  %s2003_s12 = smov 0   ;;  %s2005_s13 = smov 0  }
   0x2   :  { %s2007_s14 = smov 0   ;;  %s2009_s15 = smov 0  }
   0x3 LB: > { %s2024_s16 = sadd.s32 4294967295, %s1978_s15   ;;  %s1441_s17 = sadd.s32 4294967294, %s1978_s15   ;;  %s1978_s15 = sphi %s2009_s15, %s2523_s15   ;;  %s1974_s14 = sphi %s2007_s14, %s2522_s14   ;;  %s1970_s13 = sphi %s2005_s13, %s2521_s13   ;;  %s1966_s12 = sphi %s2003_s12, %s2520_s12  }
   0x4   : > { %s2028_s18 = sadd.s32 1, %s1978_s15   ;;  %s91_s19 = sadd.s32 1, %s1974_s14 }
   0x5   : > { %s88_s20 = ssub.s32 %s1978_s15, %s2028_s18  ;;  %p101_p0 = scmp.ne.s32.totalorder %s1974_s14, %s1970_s13 }
   0x6   : > { %p89_p1 = scmp.eq.s32.totalorder %s88_s20, 0  ;;  %p102_p2 = scmp.eq.s32.totalorder %s2024_s16, 1 }
   0x7   : > { %p107_p3 = scmp.ne.s32.totalorder %s1970_s13, %s1966_s12  ;;  %p108_p4 = scmp.eq.s32.totalorder %s1441_s17, 1 }
   0x8   : > { %s2039_s21 = scalar_select %p89_p1, %s1974_s14, %s91_s19  }
   0x9   : > { %p2041_p5 = por %p102_p2, %p101_p0  ;;  %p2045_p6 = por %p108_p4, %p107_p3 }
   0xa   : > { %p1444_p7 = scmp.ge.s32.totalorder %s1978_s15, 1  ;;  %p140_p8 = scmp.lt.s32.totalorder %s1978_s15, 3 }
   0xc   : > { %p141_p9 = pnand %p1444_p7, %p140_p8 }
   0xd   : > { %v1844_v0 = vld [vmem:[%s2515_s1 + $0x40] sm:$0xff] (!%p141_p9)   ;;  %v1848_v4 = vld [vmem:[%s2515_s1 + $0x48] sm:$0xff] (!%p141_p9)   ;;  %v1852_v8 = vld [vmem:[%s2515_s1 + $0x50] sm:$0xff] (!%p141_p9)   ;;  %p164_p10 = scmp.lt.s32.totalorder (!%p141_p9), %s2024_s16, 1  ;;  %vm226_vm0 = vcmask (!%p141_p9), 1046528   ;;  %s161_s7 = sand.u32 (!%p141_p9), 1, %s1970_s13  }
   0xe   : > { %144 = sbr.rel (%p141_p9) target bundleno = 344 (0x158), region = 32  ;;  %v1845_v1 = vld [vmem:[%s2515_s1 + $0xc0] sm:$0xff] (!%p141_p9)   ;;  %1590 = vmatprep.subr.bf16.mxu0 (!%p141_p9), %v1844_v0  ;;  %v1849_v5 = vld [vmem:[%s2515_s1 + $0xc8] sm:$0xff] (!%p141_p9)   ;;  %v1853_v9 = vld [vmem:[%s2515_s1 + $0xd0] sm:$0xff] (!%p141_p9)   ;;  %s1445_s8 = sshll.u32 (!%p141_p9), %s161_s7, 6 }
   0xf   : > { %v1846_v2 = vld [vmem:[%s2515_s1] sm:$0xff] (!%p141_p9)   ;;  %1630 = vmatprep.subr.bf16.mxu1 (!%p141_p9), %v1845_v1  ;;  %v1850_v6 = vld [vmem:[%s2515_s1 + $0x8] sm:$0xff] (!%p141_p9)   ;;  %v1854_v10 = vld [vmem:[%s2515_s1 + $0x10] sm:$0xff] (!%p141_p9)   ;;  %s163_s10 = scalar_lea.vmem (!%p141_p9), [#allocation2], %s1445_s8  ;;  %s2473_s24 = scalar_lea.sflag (!%p141_p9), [#allocation3], %s161_s7 }
  0x10   : > { %v1847_v3 = vld [vmem:[%s2515_s1 + $0x80] sm:$0xff] (!%p141_p9)   ;;  %1591 = vmatpush3.bf16.msra.mxu0 (!%p141_p9), %v1846_v2  ;;  %v1851_v7 = vld [vmem:[%s2515_s1 + $0x88] sm:$0xff] (!%p141_p9)   ;;  %v1855_v11 = vld [vmem:[%s2515_s1 + $0x90] sm:$0xff] (!%p141_p9)   ;;  %s1379_s17 = sshll.u32 (!%p141_p9), %s163_s10, 4  ;;  %s1980_s26 = smov (!%p141_p9), [#allocation2]   ;;  %s2468_s17 = int_to_ptr.vmem [resolvable:$true] %s1379_s17 }
  0x11   : > { %1631 = vmatpush3.bf16.msra.mxu1 (!%p141_p9), %v1847_v3  ;;  %1592 = vmatprep.subr.bf16.mxu0 (!%p141_p9), %v1848_v4  ;;  %v1856_v12 = vld [vmem:[%s2515_s1 + $0x58] sm:$0xff] (!%p141_p9)   ;;  %v1860_v16 = vld [vmem:[%s2515_s1 + $0x60] sm:$0xff] (!%p141_p9)   ;;  %v1864_v20 = vld [vmem:[%s2515_s1 + $0x68] sm:$0xff] (!%p141_p9)   ;;  %s1916_s25 = scalar_lea.vmem (!%p141_p9), %s2468_s17, 1024 }
  0x12   : > { %1632 = vmatprep.subr.bf16.mxu1 (!%p141_p9), %v1849_v5  ;;  %v1857_v13 = vld [vmem:[%s2515_s1 + $0xd8] sm:$0xff] (!%p141_p9)   ;;  %v1861_v17 = vld [vmem:[%s2515_s1 + $0xe0] sm:$0xff] (!%p141_p9)   ;;  %v1865_v21 = vld [vmem:[%s2515_s1 + $0xe8] sm:$0xff] (!%p141_p9)   ;;  %p1917_p11 = scmp.ne.s32.totalorder (!%p141_p9), %s2468_s17, %s1916_s25 }
  0x13   : > { %v1858_v14 = vld [vmem:[%s2515_s1 + $0x18] sm:$0xff] (!%p141_p9)   ;;  %v1862_v18 = vld [vmem:[%s2515_s1 + $0x20] sm:$0xff] (!%p141_p9)   ;;  %v1866_v22 = vld [vmem:[%s2515_s1 + $0x28] sm:$0xff] (!%p141_p9)  }
  0x14   : > { %1593 = vmatpush3.bf16.msra.mxu0 (!%p141_p9), %v1850_v6  ;;  %v1859_v15 = vld [vmem:[%s2515_s1 + $0x98] sm:$0xff] (!%p141_p9)   ;;  %v1863_v19 = vld [vmem:[%s2515_s1 + $0xa0] sm:$0xff] (!%p141_p9)   ;;  %v1867_v23 = vld [vmem:[%s2515_s1 + $0xa8] sm:$0xff] (!%p141_p9)   ;;  %p1918_p12 = pnand (!%p141_p9), %p1917_p11, %p2041_p5 }
  0x15   : > { %1633 = vmatpush3.bf16.msra.mxu1 %v1851_v7  ;;  %1594 = vmatprep.subr.bf16.mxu0 %v1852_v8  ;;  %s165_s9 = scalar_select %p164_p10, %s2024_s16, 1  ;;  %v1868_v24 = vld [vmem:[%s2515_s1 + $0x70] sm:$0xff]   ;;  %v1872_v28 = vld [vmem:[%s2515_s1 + $0x78] sm:$0xff]   ;;  %v1876_v48 = vld [vmem:[%s2515_s1 + $0x140] sm:$0xff]  }
  0x16   : > { %1634 = vmatprep.subr.bf16.mxu1 %v1853_v9  ;;  %v1869_v25 = vld [vmem:[%s2515_s1 + $0xf0] sm:$0xff]   ;;  %v1873_v29 = vld [vmem:[%s2515_s1 + $0xf8] sm:$0xff]   ;;  %v1877_v50 = vld [vmem:[%s2515_s1 + $0x1c0] sm:$0xff]   ;;  %p1919_p13 = pneg %p1918_p12 }
  0x17   : > { %v1870_v26 = vld [vmem:[%s2515_s1 + $0x30] sm:$0xff]   ;;  %s1802_s27 = smul.u32 576, %s165_s9  ;;  %v1874_v30 = vld [vmem:[%s2515_s1 + $0x38] sm:$0xff]   ;;  %v1878_v53 = vld [vmem:[%s2515_s1 + $0x100] sm:$0xff]   ;;  %s1589_s9 = sshll.u32 %s2024_s16, 10 }
  0x18   : > { %1595 = vmatpush3.bf16.msra.mxu0 %v1854_v10  ;;  %v1871_v27 = vld [vmem:[%s2515_s1 + $0xb0] sm:$0xff]   ;;  %v1875_v31 = vld [vmem:[%s2515_s1 + $0xb8] sm:$0xff]   ;;  %v1879_v55 = vld [vmem:[%s2515_s1 + $0x180] sm:$0xff]   ;;  %s2466_s16 = scalar_lea.hbm %s2517_s3, %s1589_s9 }
  0x19   : > { %1635 = vmatpush3.bf16.msra.mxu1 %v1855_v11  ;;  %1596 = vmatprep.subr.bf16.mxu0 %v1856_v12  ;;  %s2152_s11 = scalar_lea.vmem %s2514_s0, %s1802_s27  ;;  %v1880_v56 = vld [vmem:[%s2515_s1 + $0x148] sm:$0xff]   ;;  %s1920_s27 = sshll.u32 %s1980_s26, 4  ;;  %s1921_s27 = int_to_ptr.vmem [resolvable:$false] %s1920_s27 }
  0x1a   : > { %1636 = vmatprep.subr.bf16.mxu1 %v1857_v13  ;;  %v182_v32 = vld [vmem:[%s2152_s11 + $0x8] sm:$0xff]  ;;  %v1447_v34 = vld [vmem:[%s2152_s11 + $0x20] sm:$0xff]  ;;  %v195_v42 = vld [vmem:[%s2152_s11 + $0x10] sm:$0x1]  ;;  %s1922_s28 = scalar_lea.vmem %s1921_s27, 2048  ;;  %p1923_p0 = scmp.lt.s32.totalorder %s2468_s17, %s1921_s27 }
  0x1b   : > { %v2156_v33 = vld [vmem:[%s2152_s11 + $0x48] sm:$0xff]  ;;  %v1448_v36 = vld [vmem:[%s2152_s11 + $0x60] sm:$0xff]  ;;  %v197_v44 = vld [vmem:[%s2152_s11 + $0x50] sm:$0x1]  ;;  %v228_v46 = vrot.slane %v195_v42, 1  ;;  %p1924_p1 = scmp.lt.s32.totalorder %s1922_s28, %s1916_s25 }
  0x1c   : > { %1597 = vmatpush3.bf16.msra.mxu0 %v1858_v14  ;;  %v190_v35 = vpack.c.bf16 %v2156_v33, %v182_v32  ;;  %v170_v37 = vld [vmem:[%s2152_s11] sm:$0xff]  ;;  %v272_v39 = vpack.c.bf16 %v1448_v36, %v1447_v34  ;;  %v231_v49 = vrot.slane %v197_v44, 1  ;;  %v1881_v57 = vld [vmem:[%s2515_s1 + $0x1c8] sm:$0xff]   ;;  %v199_v6 = vld [vmem:[%s2152_s11 + $0x90] sm:$0x1] }
  0x1d   : > { %1637 = vmatpush3.bf16.msra.mxu1 %v1859_v15  ;;  %1598 = vmatprep.subr.bf16.mxu0 %v1860_v16  ;;  %v2163_v38 = vld [vmem:[%s2152_s11 + $0x40] sm:$0xff]  ;;  %v1882_v58 = vld [vmem:[%s2515_s1 + $0x108] sm:$0xff]   ;;  %v201_v8 = vld [vmem:[%s2152_s11 + $0xd0] sm:$0x1]  ;;  %v234_v10 = vrot.slane %v199_v6, 1  ;;  %p1925_p2 = por %p1924_p1, %p1923_p0 }
  0x1e   : > { %1638 = vmatprep.subr.bf16.mxu1 %v1861_v17  ;;  %v178_v40 = vpack.c.bf16 %v2163_v38, %v170_v37  ;;  %v194_v41 = vld [vmem:[%s2152_s11] sm:$0xfe]  ;;  %1064 = vmatprep.mubr.bf16.mxu0 %v190_v35  ;;  %v1883_v59 = vld [vmem:[%s2515_s1 + $0x188] sm:$0xff]   ;;  %v237_v12 = vrot.slane %v201_v8, 1  ;;  %v1884_v13 = vld [vmem:[%s2515_s1 + $0x150] sm:$0xff]  }
  0x1f   : > { %v196_v43 = vld [vmem:[%s2152_s11 + $0x40] sm:$0xfe]  ;;  %v227_v45 = vrot.slane %v194_v41, 1  ;;  %1129 = vmatprep.mubr.bf16.mxu1 %v272_v39  ;;  %v2197_v60 = vld [vmem:[%s2152_s11 + $0x88] sm:$0xff]  ;;  %v1885_v16 = vld [vmem:[%s2515_s1 + $0x1d0] sm:$0xff]   ;;  %p1926_p3 = pnand %p1925_p2, %p1919_p13 }
  0x20   : > { %1599 = vmatpush3.bf16.msra.mxu0 %v1862_v18  ;;  %v230_v47 = vrot.slane %v196_v43, 1  ;;  %v2200_v61 = vld [vmem:[%s2152_s11 + $0xc8] sm:$0xff]  ;;  %v1449_v62 = vld [vmem:[%s2152_s11 + $0xa0] sm:$0xff]  ;;  %v1886_v18 = vld [vmem:[%s2515_s1 + $0x110] sm:$0xff]  }
  0x21   : > { %1639 = vmatpush3.bf16.msra.mxu1 %v1863_v19  ;;  %1600 = vmatprep.subr.bf16.mxu0 %v1864_v20  ;;  %v229_v51 = vsel %vm226_vm0, %v227_v45, %v228_v46  ;;  %v1450_v63 = vld [vmem:[%s2152_s11 + $0xe0] sm:$0xff]  ;;  %v191_v0 = vpack.c.bf16 %v2200_v61, %v2197_v60  ;;  %v1887_v19 = vld [vmem:[%s2515_s1 + $0x190] sm:$0xff]   ;;  %v1888_v20 = vld [vmem:[%s2515_s1 + $0x158] sm:$0xff]  }
  0x22   : > { %1640 = vmatprep.subr.bf16.mxu1 %v1865_v21  ;;  %v232_v52 = vsel %vm226_vm0, %v230_v47, %v231_v49  ;;  %v273_v1 = vpack.c.bf16 %v1450_v63, %v1449_v62  ;;  %v2207_v2 = vld [vmem:[%s2152_s11 + $0x80] sm:$0xff]  ;;  %v1889_v21 = vld [vmem:[%s2515_s1 + $0x1d8] sm:$0xff]   ;;  %v203_v35 = vld [vmem:[%s2152_s11 + $0x110] sm:$0x1] }
  0x23   : > { %v259_v54 = vpack.c.bf16 %v232_v52, %v229_v51  ;;  %v2210_v3 = vld [vmem:[%s2152_s11 + $0xc0] sm:$0xff]  ;;  %v205_v37 = vld [vmem:[%s2152_s11 + $0x150] sm:$0x1]  ;;  %v1897_v51 = vld [vmem:[%s2515_s1 + $0x1e8] sm:$0xff]  }
  0x24   : > { %1601 = vmatpush3.bf16.msra.mxu0 %v1866_v22  ;;  %v198_v4 = vld [vmem:[%s2152_s11 + $0x80] sm:$0xfe]  ;;  %v179_v5 = vpack.c.bf16 %v2210_v3, %v2207_v2  ;;  %v1890_v22 = vld [vmem:[%s2515_s1 + $0x118] sm:$0xff]   ;;  %v243_v42 = vrot.slane %v205_v37, 1  ;;  %v1898_v52 = vld [vmem:[%s2515_s1 + $0x128] sm:$0xff]  }
  0x25   : > { %1641 = vmatpush3.bf16.msra.mxu1 %v1867_v23  ;;  %1602 = vmatprep.subr.bf16.mxu0 %v1868_v24  ;;  %v200_v7 = vld [vmem:[%s2152_s11 + $0xc0] sm:$0xfe]  ;;  %v233_v9 = vrot.slane %v198_v4, 1  ;;  %v1891_v23 = vld [vmem:[%s2515_s1 + $0x198] sm:$0xff]   ;;  %v2245_v24 = vld [vmem:[%s2152_s11 + $0x108] sm:$0xff] }
  0x26   : > { %1642 = vmatprep.subr.bf16.mxu1 %v1869_v25  ;;  %v236_v11 = vrot.slane %v200_v7, 1  ;;  %v2248_v25 = vld [vmem:[%s2152_s11 + $0x148] sm:$0xff]  ;;  %v202_v32 = vld [vmem:[%s2152_s11 + $0x100] sm:$0xfe]  ;;  %v207_v4 = vld [vmem:[%s2152_s11 + $0x190] sm:$0x1] }
  0x27   : > { %v235_v14 = vsel %vm226_vm0, %v233_v9, %v234_v10  ;;  %v204_v36 = vld [vmem:[%s2152_s11 + $0x140] sm:$0xfe]  ;;  %v239_v39 = vrot.slane %v202_v32, 1  ;;  %v209_v6 = vld [vmem:[%s2152_s11 + $0x1d0] sm:$0x1]  ;;  %v246_v8 = vrot.slane %v207_v4, 1 }
  0x28   : > { %1603 = vmatpush3.bf16.msra.mxu0 %v1870_v26  ;;  %v238_v15 = vsel %vm226_vm0, %v236_v11, %v237_v12  ;;  %v1451_v26 = vld [vmem:[%s2152_s11 + $0x120] sm:$0xff]  ;;  %v242_v41 = vrot.slane %v204_v36, 1  ;;  %v249_v10 = vrot.slane %v209_v6, 1  ;;  %v1900_v11 = vld [vmem:[%s2515_s1 + $0x170] sm:$0xff]   ;;  %v1455_v36 = vld [vmem:[%s2152_s11 + $0x28] sm:$0xff] }
  0x29   : > { %1643 = vmatpush3.bf16.msra.mxu1 %v1871_v27  ;;  %1604 = vmatprep.subr.bf16.mxu0 %v1872_v28  ;;  %v260_v17 = vpack.c.bf16 %v238_v15, %v235_v14  ;;  %v1452_v27 = vld [vmem:[%s2152_s11 + $0x160] sm:$0xff]  ;;  %v192_v28 = vpack.c.bf16 %v2248_v25, %v2245_v24  ;;  %v1901_v14 = vld [vmem:[%s2515_s1 + $0x1f0] sm:$0xff]   ;;  %v377_v15 = vpack.c.bf16 %v2197_v60, %v2156_v33  ;;  %v1904_v33 = vld [vmem:[%s2515_s1 + $0x178] sm:$0xff]  }
  0x2a   : > { %1644 = vmatprep.subr.bf16.mxu1 %v1873_v29  ;;  %v274_v29 = vpack.c.bf16 %v1452_v27, %v1451_v26  ;;  %v1892_v43 = vld [vmem:[%s2515_s1 + $0x160] sm:$0xff]   ;;  %v244_v45 = vsel %vm226_vm0, %v242_v41, %v243_v42  ;;  %v1905_v60 = vld [vmem:[%s2515_s1 + $0x1f8] sm:$0xff]   ;;  %v1466_v26 = vld [vmem:[%s2152_s11 + $0x70] sm:$0x1]  ;;  %v365_v27 = vpack.c.bf16 %v2207_v2, %v2163_v38 }
  0x2b   : > { %v1893_v46 = vld [vmem:[%s2515_s1 + $0x1e0] sm:$0xff]   ;;  %v1456_v37 = vld [vmem:[%s2152_s11 + $0x68] sm:$0xff]  ;;  %v1468_v42 = vld [vmem:[%s2152_s11 + $0xb0] sm:$0x1] }
  0x2c   : > { %1605 = vmatpush3.bf16.msra.mxu0 %v1874_v30  ;;  %v2255_v30 = vld [vmem:[%s2152_s11 + $0x100] sm:$0xff] }
  0x2d   : > { %1645 = vmatpush3.bf16.msra.mxu1 %v1875_v31  ;;  %1670 = vmatprep.subr.bf16.mxu0 %v1876_v48  ;;  %v2258_v31 = vld [vmem:[%s2152_s11 + $0x140] sm:$0xff] }
  0x2e   : > { %1710 = vmatprep.subr.bf16.mxu1 %v1877_v50  ;;  %v180_v34 = vpack.c.bf16 %v2258_v31, %v2255_v30  ;;  %v1894_v48 = vld [vmem:[%s2515_s1 + $0x120] sm:$0xff]   ;;  %v1896_v50 = vld [vmem:[%s2515_s1 + $0x168] sm:$0xff]  }
  0x2f   : > { %1065 = vmatmul.mubr.bf16.vlgmr.msra.gmra.mrb[0].mxu0 %v178_v40  ;;  %v240_v40 = vrot.slane %v203_v35, 1  ;;  %v1895_v49 = vld [vmem:[%s2515_s1 + $0x1a0] sm:$0xff]   ;;  %v324_v35 = vrot.slane %v1466_v26, 1 }
  0x30   : > { %1671 = vmatpush3.bf16.msra.mxu0 %v1878_v53  ;;  %1130 = vmatmul.mubr.bf16.vlgmr.msra.gmra.mrb[0].mxu1 %v259_v54  ;;  %v1899_v53 = vld [vmem:[%s2515_s1 + $0x1a8] sm:$0xff]   ;;  %v2303_v62 = vld [vmem:[%s2152_s11 + $0x180] sm:$0xff] }
  0x31   : > { %1711 = vmatpush3.bf16.msra.mxu1 %v1879_v55  ;;  %1672 = vmatprep.subr.bf16.mxu0 %v1880_v56  ;;  %v241_v44 = vsel %vm226_vm0, %v239_v39, %v240_v40  ;;  %v2293_v54 = vld [vmem:[%s2152_s11 + $0x188] sm:$0xff]  ;;  %v1453_v56 = vld [vmem:[%s2152_s11 + $0x1a0] sm:$0xff] }
  0x32   : > { %1712 = vmatprep.subr.bf16.mxu1 %v1881_v57  ;;  %1072 = vmatprep.mubr.bf16.mxu0 %v191_v0  ;;  %v261_v47 = vpack.c.bf16 %v244_v45, %v241_v44  ;;  %v2296_v55 = vld [vmem:[%s2152_s11 + $0x1c8] sm:$0xff]  ;;  %v1454_v57 = vld [vmem:[%s2152_s11 + $0x1e0] sm:$0xff]  ;;  %v1470_v44 = vld [vmem:[%s2152_s11 + $0xf0] sm:$0x1]  ;;  %v379_v6 = vpack.c.bf16 %v2293_v54, %v2248_v25 }
  0x33   : > { %1137 = vmatprep.mubr.bf16.mxu1 %v273_v1  ;;  %v2306_v63 = vld [vmem:[%s2152_s11 + $0x1c0] sm:$0xff] }
  0x34   : > { %1673 = vmatpush3.bf16.msra.mxu0 %v1882_v58  ;;  %v193_v58 = vpack.c.bf16 %v2296_v55, %v2293_v54  ;;  %v206_v0 = vld [vmem:[%s2152_s11 + $0x180] sm:$0xfe]  ;;  %v181_v1 = vpack.c.bf16 %v2306_v63, %v2303_v62 }
  0x35   : > { %1713 = vmatpush3.bf16.msra.mxu1 %v1883_v59  ;;  %1674 = vmatprep.subr.bf16.mxu0 %v1884_v13  ;;  %v275_v59 = vpack.c.bf16 %v1454_v57, %v1453_v56  ;;  %v245_v7 = vrot.slane %v206_v0, 1  ;;  %v1908_v39 = vld [vmem:[%s2515_s1 + $0x200] sm:$0xff]   ;;  %v366_v56 = vpack.c.bf16 %v2255_v30, %v2210_v3  ;;  %v1911_v30 = vld [vmem:[%s2515_s1 + $0x218] sm:$0xff]  }
  0x36   : > { %1714 = vmatprep.subr.bf16.mxu1 %v1885_v16  ;;  %v1467_v41 = vld [vmem:[%s2152_s11 + $0xa0] sm:$0xfe] }
  0x37   : > { %1073 = vmatmul.mubr.bf16.gmra.mrb[4].mxu0 %v179_v5  ;;  %v208_v5 = vld [vmem:[%s2152_s11 + $0x1c0] sm:$0xfe]  ;;  %v247_v12 = vsel %vm226_vm0, %v245_v7, %v246_v8  ;;  %v326_v45 = vrot.slane %v1467_v41, 1  ;;  %v1461_v41 = vld [vmem:[%s2152_s11 + $0x1a8] sm:$0xff] }
  0x38   : > { %1138 = vmatmul.mubr.bf16.gmra.mrb[4].mxu1 %v260_v17  ;;  %1675 = vmatpush3.bf16.msra.mxu0 %v1886_v18  ;;  %v248_v9 = vrot.slane %v208_v5, 1  ;;  %v1902_v17 = vld [vmem:[%s2515_s1 + $0x130] sm:$0xff]   ;;  %v1471_v57 = vld [vmem:[%s2152_s11 + $0x120] sm:$0xfe] }
  0x39   : > { %1715 = vmatpush3.bf16.msra.mxu1 %v1887_v19  ;;  %1676 = vmatprep.subr.bf16.mxu0 %v1888_v20  ;;  %v1903_v18 = vld [vmem:[%s2515_s1 + $0x1b0] sm:$0xff]   ;;  %v1906_v19 = vld [vmem:[%s2515_s1 + $0x138] sm:$0xff]   ;;  %v1473_v0 = vld [vmem:[%s2152_s11 + $0x160] sm:$0xfe]  ;;  %v332_v4 = vrot.slane %v1471_v57, 1 }
  0x3a   : > { %1716 = vmatprep.subr.bf16.mxu1 %v1889_v21  ;;  %1080 = vmatprep.mubr.bf16.mxu0 %v192_v28  ;;  %v250_v13 = vsel %vm226_vm0, %v248_v9, %v249_v10  ;;  %v1907_v20 = vld [vmem:[%s2515_s1 + $0x1b8] sm:$0xff]   ;;  %v1463_v21 = vld [vmem:[%s2152_s11 + $0x20] sm:$0xfe]  ;;  %v378_v28 = vpack.c.bf16 %v2245_v24, %v2200_v61  ;;  %v284_v61 = vpack.c.bf16 %v1456_v37, %v1455_v36  ;;  %v1909_v24 = vld [vmem:[%s2515_s1 + $0x208] sm:$0xff]   ;;  %v335_v7 = vrot.slane %v1473_v0, 1 }
  0x3b   : > { %1145 = vmatprep.mubr.bf16.mxu1 %v274_v29  ;;  %v262_v16 = vpack.c.bf16 %v250_v13, %v247_v12  ;;  %v320_v29 = vrot.slane %v1463_v21, 1  ;;  %v1475_v54 = vld [vmem:[%s2152_s11 + $0x1a0] sm:$0xfe]  ;;  %v1478_v13 = vld [vmem:[%s2152_s11 + $0x1f0] sm:$0x1]  ;;  %v1913_v21 = vld [vmem:[%s2515_s1 + $0x228] sm:$0xff]  }
  0x3c   : > { %1677 = vmatpush3.bf16.msra.mxu0 %v1890_v22  ;;  %v1464_v22 = vld [vmem:[%s2152_s11 + $0x30] sm:$0x1]  ;;  %v1477_v12 = vld [vmem:[%s2152_s11 + $0x1e0] sm:$0xfe] }
  0x3d   : > { %1717 = vmatpush3.bf16.msra.mxu1 %v1891_v23  ;;  %1678 = vmatprep.subr.bf16.mxu0 %v1892_v43  ;;  %v1465_v23 = vld [vmem:[%s2152_s11 + $0x60] sm:$0xfe]  ;;  %v321_v32 = vrot.slane %v1464_v22, 1  ;;  %v1510_v0 = vld [vmem:[%s2152_s11 + $0x210] sm:$0x1] }
  0x3e   : > { %1718 = vmatprep.subr.bf16.mxu1 %v1893_v46  ;;  %v1469_v43 = vld [vmem:[%s2152_s11 + $0xe0] sm:$0xfe]  ;;  %v327_v46 = vrot.slane %v1468_v42, 1  ;;  %v1462_v42 = vld [vmem:[%s2152_s11 + $0x1e8] sm:$0xff] }
  0x3f   : > { %1081 = vmatmul.mubr.bf16.gmra.mrb[8].mxu0 %v180_v34  ;;  %v323_v34 = vrot.slane %v1465_v23, 1  ;;  %v322_v38 = vsel %vm226_vm0, %v320_v29, %v321_v32  ;;  %v1486_v29 = vld [vmem:[%s2152_s11 + $0x200] sm:$0xff]  ;;  %v1498_v32 = vld [vmem:[%s2152_s11 + $0x90] sm:$0x1] }
  0x40   : > { %1146 = vmatmul.mubr.bf16.gmra.mrb[8].mxu1 %v261_v47  ;;  %1679 = vmatpush3.bf16.msra.mxu0 %v1894_v48  ;;  %v329_v47 = vrot.slane %v1469_v43, 1  ;;  %v330_v48 = vrot.slane %v1470_v44, 1  ;;  %v417_v37 = vrot.slane %v1498_v32, 1 }
  0x41   : > { %1719 = vmatpush3.bf16.msra.mxu1 %v1895_v49  ;;  %1680 = vmatprep.subr.bf16.mxu0 %v1896_v50  ;;  %v325_v2 = vsel %vm226_vm0, %v323_v34, %v324_v35  ;;  %v1457_v49 = vld [vmem:[%s2152_s11 + $0xa8] sm:$0xff]  ;;  %v328_v50 = vsel %vm226_vm0, %v326_v45, %v327_v46  ;;  %v368_v45 = vpack.c.bf16 %v1486_v29, %v2306_v63  ;;  %v1914_v46 = vld [vmem:[%s2515_s1 + $0x230] sm:$0xff]  }
  0x42   : > { %1720 = vmatprep.subr.bf16.mxu1 %v1897_v51  ;;  %1088 = vmatprep.mubr.bf16.mxu0 %v193_v58  ;;  %v352_v40 = vpack.c.bf16 %v325_v2, %v322_v38  ;;  %v1910_v51 = vld [vmem:[%s2515_s1 + $0x210] sm:$0xff]   ;;  %v1505_v2 = vld [vmem:[%s2152_s11 + $0x180] sm:$0xfe] }
  0x43   : > { %1153 = vmatprep.mubr.bf16.mxu1 %v275_v59  ;;  %v1472_v58 = vld [vmem:[%s2152_s11 + $0x130] sm:$0x1]  ;;  %v428_v43 = vrot.slane %v1505_v2, 1 }
  0x44   : > { %1681 = vmatpush3.bf16.msra.mxu0 %v1898_v52  ;;  %v331_v52 = vsel %vm226_vm0, %v329_v47, %v330_v48  ;;  %v333_v5 = vrot.slane %v1472_v58, 1  ;;  %v1504_v38 = vld [vmem:[%s2152_s11 + $0x150] sm:$0x1]  ;;  %v1499_v48 = vld [vmem:[%s2152_s11 + $0xc0] sm:$0xfe] }
  0x45   : > { %1721 = vmatpush3.bf16.msra.mxu1 %v1899_v53  ;;  %1682 = vmatprep.subr.bf16.mxu0 %v1900_v11  ;;  %v1458_v53 = vld [vmem:[%s2152_s11 + $0xe8] sm:$0xff]  ;;  %v353_v59 = vpack.c.bf16 %v331_v52, %v328_v50  ;;  %v1476_v11 = vld [vmem:[%s2152_s11 + $0x1b0] sm:$0x1]  ;;  %v1501_v58 = vld [vmem:[%s2152_s11 + $0x100] sm:$0xfe] }
  0x46   : > { %1722 = vmatprep.subr.bf16.mxu1 %v1901_v14  ;;  %v285_v3 = vpack.c.bf16 %v1458_v53, %v1457_v49  ;;  %v334_v9 = vsel %vm226_vm0, %v332_v4, %v333_v5  ;;  %v1459_v14 = vld [vmem:[%s2152_s11 + $0x128] sm:$0xff]  ;;  %v1507_v49 = vld [vmem:[%s2152_s11 + $0x1c0] sm:$0xfe]  ;;  %v1500_v53 = vld [vmem:[%s2152_s11 + $0xd0] sm:$0x1] }
  0x47   : > { %1089 = vmatmul.mubr.bf16.gmra.mrb[12].mxu0 %v181_v1  ;;  %v1474_v1 = vld [vmem:[%s2152_s11 + $0x170] sm:$0x1] }
  0x48   : > { %1154 = vmatmul.mubr.bf16.gmra.mrb[12].mxu1 %v262_v16  ;;  %1683 = vmatpush3.bf16.msra.mxu0 %v1902_v17  ;;  %v336_v8 = vrot.slane %v1474_v1, 1  ;;  %v339_v16 = vrot.slane %v1476_v11, 1  ;;  %v341_v17 = vrot.slane %v1477_v12, 1  ;;  %v1508_v63 = vld [vmem:[%s2152_s11 + $0x1d0] sm:$0x1]  ;;  %v431_v1 = vrot.slane %v1507_v49, 1 }
  0x49   : > { %1723 = vmatpush3.bf16.msra.mxu1 %v1903_v18  ;;  %1259 = vmatprep.mubr.bf16.mxu1 %v377_v15  ;;  %v338_v15 = vrot.slane %v1475_v54, 1  ;;  %v342_v18 = vrot.slane %v1478_v13, 1  ;;  %v432_v4 = vrot.slane %v1508_v63, 1 }
  0x4a   : > { %1684 = vmatprep.subr.bf16.mxu0 %v1904_v33  ;;  %1724 = vmatprep.subr.bf16.mxu1 %v1905_v60  ;;  %v337_v25 = vsel %vm226_vm0, %v335_v7, %v336_v8  ;;  %v1494_v33 = vld [vmem:[%s2152_s11 + $0x208] sm:$0xff]  ;;  %v287_v7 = vpack.c.bf16 %v1462_v42, %v1461_v41  ;;  %v1915_v8 = vld [vmem:[%s2515_s1 + $0x238] sm:$0xff]  }
  0x4b   : > { %1194 = vmatprep.mubr.bf16.mxu0 %v352_v40  ;;  %v354_v10 = vpack.c.bf16 %v337_v25, %v334_v9  ;;  %v1460_v60 = vld [vmem:[%s2152_s11 + $0x168] sm:$0xff]  ;;  %v340_v22 = vsel %vm226_vm0, %v338_v15, %v339_v16  ;;  %v343_v23 = vsel %vm226_vm0, %v341_v17, %v342_v18  ;;  %v380_v26 = vpack.c.bf16 %v1494_v33, %v2296_v55  ;;  %v1511_v18 = vld [vmem:[%s2516_s2] ss:$0 sm:$0xff] }
  0x4c   : > { %1685 = vmatpush3.bf16.msra.mxu0 %v1906_v19  ;;  %v1912_v19 = vld [vmem:[%s2515_s1 + $0x220] sm:$0xff]   ;;  %v355_v55 = vpack.c.bf16 %v343_v23, %v340_v22  ;;  %v426_v40 = vrot.slane %v1504_v38, 1  ;;  %v420_v9 = vrot.slane %v1500_v53, 1  ;;  %v422_v25 = vrot.slane %v1501_v58, 1 }
  0x4d   : > { %1725 = vmatpush3.bf16.msra.mxu1 %v1907_v20  ;;  %1762 = vmatprep.subr.bf16.mxu0 %v1908_v39  ;;  %v367_v20 = vpack.c.bf16 %v2303_v62, %v2258_v31  ;;  %v1496_v31 = vld [vmem:[%s2152_s11 + $0x50] sm:$0x1]  ;;  %v1497_v62 = vld [vmem:[%s2152_s11 + $0x80] sm:$0xfe] }
  0x4e   : > { %1786 = vmatprep.subr.bf16.mxu1 %v1908_v39  ;;  %v414_v35 = vrot.slane %v1496_v31, 1  ;;  %v416_v36 = vrot.slane %v1497_v62, 1 }
  0x4f   : > { %1195 = vmatmul.mubr.bf16.vlgmr.msra.gmra.mrb[16].mxu0 %v284_v61  ;;  %v1506_v61 = vld [vmem:[%s2152_s11 + $0x190] sm:$0x1] }
  0x50   : > { %1260 = vmatmul.mubr.bf16.vlgmr.msra.gmra.mrb[16].mxu1 %v365_v27  ;;  %1763 = vmatpush3.bf16.msra.mxu0 %v1908_v39  ;;  %v1495_v27 = vld [vmem:[%s2152_s11 + $0x40] sm:$0xfe]  ;;  %v429_v44 = vrot.slane %v1506_v61, 1 }
  0x51   : > { %1267 = vmatprep.mubr.bf16.mxu1 %v378_v28  ;;  %1794 = vmatpush3.bf16.msra.mxu1 %v1908_v39  ;;  %v286_v28 = vpack.c.bf16 %v1460_v60, %v1459_v14  ;;  %v413_v34 = vrot.slane %v1495_v27, 1  ;;  %v1503_v39 = vld [vmem:[%s2152_s11 + $0x140] sm:$0xfe] }
  0x52   : > { %1787 = vmatprep.subr.bf16.mxu1 %v1909_v24  ;;  %1764 = vmatprep.subr.bf16.mxu0 %v1909_v24  ;;  %v430_v52 = vsel %vm226_vm0, %v428_v43, %v429_v44 }
  0x53   : > { %1202 = vmatprep.mubr.bf16.mxu0 %v353_v59  ;;  %v415_v50 = vsel %vm226_vm0, %v413_v34, %v414_v35  ;;  %v1502_v59 = vld [vmem:[%s2152_s11 + $0x110] sm:$0x1] }
  0x54   : > { %1765 = vmatpush3.bf16.msra.mxu0 %v1909_v24  ;;  %v423_v54 = vrot.slane %v1502_v59, 1 }
  0x55   : > { %1795 = vmatpush3.bf16.msra.mxu1 %v1909_v24  ;;  %1766 = vmatprep.subr.bf16.mxu0 %v1910_v51  ;;  %v425_v24 = vrot.slane %v1503_v39, 1 }
  0x56   : > { %1788 = vmatprep.subr.bf16.mxu1 %v1910_v51  ;;  %v424_v13 = vsel %vm226_vm0, %v422_v25, %v423_v54 }
  0x57   : > { %1203 = vmatmul.mubr.bf16.gmra.mrb[20].mxu0 %v285_v3  ;;  %v427_v47 = vsel %vm226_vm0, %v425_v24, %v426_v40 }
  0x58   : > { %1268 = vmatmul.mubr.bf16.gmra.mrb[20].mxu1 %v366_v56  ;;  %1767 = vmatpush3.bf16.msra.mxu0 %v1910_v51  ;;  %v1509_v56 = vld [vmem:[%s2152_s11 + $0x200] sm:$0xfe]  ;;  %v447_v57 = vpack.c.bf16 %v430_v52, %v427_v47 }
  0x59   : > { %1275 = vmatprep.mubr.bf16.mxu1 %v379_v6  ;;  %1796 = vmatpush3.bf16.msra.mxu1 %v1910_v51  ;;  %v418_v51 = vsel %vm226_vm0, %v416_v36, %v417_v37  ;;  %v434_v5 = vrot.slane %v1509_v56, 1  ;;  %v435_v6 = vrot.slane %v1510_v0, 1 }
  0x5a   : > { %1789 = vmatprep.subr.bf16.mxu1 %v1911_v30  ;;  %1210 = vmatprep.mubr.bf16.mxu0 %v354_v10  ;;  %v445_v3 = vpack.c.bf16 %v418_v51, %v415_v50  ;;  %v433_v10 = vsel %vm226_vm0, %v431_v1, %v432_v4 }
  0x5b   : > { %1768 = vmatprep.subr.bf16.mxu0 %v1911_v30  ;;  %v436_v11 = vsel %vm226_vm0, %v434_v5, %v435_v6 }
  0x5c   : > { %1769 = vmatpush3.bf16.msra.mxu0 %v1911_v30  ;;  %v448_v14 = vpack.c.bf16 %v436_v11, %v433_v10 }
  0x5d   : > { %1797 = vmatpush3.bf16.msra.mxu1 %v1911_v30  ;;  %1770 = vmatprep.subr.bf16.mxu0 %v1912_v19  ;;  %v419_v30 = vrot.slane %v1499_v48, 1 }
  0x5e   : > { %1790 = vmatprep.subr.bf16.mxu1 %v1912_v19 }
  0x5f   : > { %1211 = vmatmul.mubr.bf16.gmra.mrb[24].mxu0 %v286_v28  ;;  %v421_v12 = vsel %vm226_vm0, %v419_v30, %v420_v9 }
  0x60   : > { %1276 = vmatmul.mubr.bf16.gmra.mrb[24].mxu1 %v367_v20  ;;  %1771 = vmatpush3.bf16.msra.mxu0 %v1912_v19  ;;  %v446_v15 = vpack.c.bf16 %v424_v13, %v421_v12 }
  0x61   : > { %1283 = vmatprep.mubr.bf16.mxu1 %v380_v26  ;;  %1798 = vmatpush3.bf16.msra.mxu1 %v1912_v19 }
  0x62   : > { %1791 = vmatprep.subr.bf16.mxu1 %v1913_v21  ;;  %1218 = vmatprep.mubr.bf16.mxu0 %v355_v55 }
  0x63   : > { %1772 = vmatprep.subr.bf16.mxu0 %v1913_v21 }
  0x64   : > { %1773 = vmatpush3.bf16.msra.mxu0 %v1913_v21 }
  0x65   : > { %1799 = vmatpush3.bf16.msra.mxu1 %v1913_v21  ;;  %1774 = vmatprep.subr.bf16.mxu0 %v1914_v46 }
  0x66   : > { %1792 = vmatprep.subr.bf16.mxu1 %v1914_v46 }
  0x67   : > { %1219 = vmatmul.mubr.bf16.gmra.mrb[28].mxu0 %v287_v7 }
  0x68   : > { %1284 = vmatmul.mubr.bf16.gmra.mrb[28].mxu1 %v368_v45  ;;  %1775 = vmatpush3.bf16.msra.mxu0 %v1914_v46 }
  0x69   : > { %1782 = vmatprep.mubr.bf16.mxu1 %v447_v57  ;;  %1800 = vmatpush3.bf16.msra.mxu1 %v1914_v46 }
  0x6a   : > { %1793 = vmatprep.subr.bf16.mxu1 %v1915_v8  ;;  %1778 = vmatprep.mubr.bf16.mxu0 %v445_v3 }
  0x6b   : > { %1776 = vmatprep.subr.bf16.mxu0 %v1915_v8 }
  0x6c   : > { %1777 = vmatpush3.bf16.msra.mxu0 %v1915_v8 }
  0x6d   : > { %1801 = vmatpush3.bf16.msra.mxu1 %v1915_v8 }
  0x6f   : > { %1779 = vmatmul.mubr.bf16.vlgmr.msra.gmra.mrb[32].mxu0 %v446_v15 }
  0x70   : > { %1783 = vmatmul.mubr.bf16.vlgmr.msra.gmra.mrb[32].mxu1 %v448_v14 }
 0x102   : > { %v1606_v16 = vpop.f32.mrb[0].mxu0 }
 0x103   : > { %v1607_v17 = vpop.f32.mrb[1].mxu0  ;;  %v1646_v21 = vpop.f32.mrb[0].mxu1 }
 0x104   : > { %v1608_v33 = vadd.f32 %v1607_v17, %v1606_v16  ;;  %v1609_v60 = vpop.f32.mrb[2].mxu0  ;;  %v1647_v23 = vpop.f32.mrb[1].mxu1 }
 0x105   : > { %v1610_v19 = vpop.f32.mrb[3].mxu0  ;;  %v1648_v26 = vadd.f32 %v1647_v23, %v1646_v21  ;;  %v1649_v27 = vpop.f32.mrb[2].mxu1 }
 0x106   : > { %v1611_v20 = vadd.f32 %v1610_v19, %v1609_v60  ;;  %v1067_v22 = vadd.f32 %v1608_v33, %v1511_v18  ;;  %v1650_v29 = vpop.f32.mrb[3].mxu1 }
 0x107   : > { %v1651_v62 = vadd.f32 %v1650_v29, %v1649_v27 }
 0x108   : > { %v1070_v28 = vadd.f32 %v1611_v20, %v1511_v18  ;;  %v1132_v31 = vadd.f32 %v1648_v26, %v1067_v22 }
 0x10a   : > { %v2439_v32 = vadd.f32 %v1651_v62, %v1070_v28  ;;  %v1612_v34 = vpop.f32.mrb[4].mxu0 }
 0x10b   : > { %v1613_v35 = vpop.f32.mrb[5].mxu0  ;;  %v1652_v55 = vpop.f32.mrb[4].mxu1 }
 0x10c   : > { %v1614_v36 = vadd.f32 %v1613_v35, %v1612_v34  ;;  %v1615_v37 = vpop.f32.mrb[6].mxu0  ;;  %v1653_v61 = vpop.f32.mrb[5].mxu1 }
 0x10d   : > { %v1616_v39 = vpop.f32.mrb[7].mxu0  ;;  %v1654_v24 = vadd.f32 %v1653_v61, %v1652_v55  ;;  %v1655_v40 = vpop.f32.mrb[6].mxu1 }
 0x10e   : > { %v1075_v38 = vadd.f32 %v1614_v36, %v1511_v18  ;;  %v1617_v2 = vadd.f32 %v1616_v39, %v1615_v37  ;;  %v1656_v42 = vpop.f32.mrb[7].mxu1 }
 0x10f   : > { %v1657_v44 = vadd.f32 %v1656_v42, %v1655_v40 }
 0x110   : > { %v1078_v41 = vadd.f32 %v1617_v2, %v1511_v18  ;;  %v1140_v43 = vadd.f32 %v1654_v24, %v1075_v38 }
 0x112   : > { %v2441_v45 = vadd.f32 %v1657_v44, %v1078_v41  ;;  %v1618_v46 = vpop.f32.mrb[8].mxu0 }
 0x113   : > { %v1619_v47 = vpop.f32.mrb[9].mxu0  ;;  %v1658_v51 = vpop.f32.mrb[8].mxu1 }
 0x114   : > { %v1620_v48 = vadd.f32 %v1619_v47, %v1618_v46  ;;  %v1621_v49 = vpop.f32.mrb[10].mxu0  ;;  %v1659_v63 = vpop.f32.mrb[9].mxu1 }
 0x115   : > { %v1622_v50 = vpop.f32.mrb[11].mxu0  ;;  %v1660_v56 = vadd.f32 %v1659_v63, %v1658_v51  ;;  %v1661_v57 = vpop.f32.mrb[10].mxu1 }
 0x116   : > { %v1083_v52 = vadd.f32 %v1620_v48, %v1511_v18  ;;  %v1623_v53 = vadd.f32 %v1622_v50, %v1621_v49  ;;  %v1662_v59 = vpop.f32.mrb[11].mxu1 }
 0x117   : > { %v1663_v1 = vadd.f32 %v1662_v59, %v1661_v57 }
 0x118   : > { %v1086_v58 = vadd.f32 %v1623_v53, %v1511_v18  ;;  %v1148_v0 = vadd.f32 %v1660_v56, %v1083_v52 }
 0x11a   : > { %v2443_v4 = vadd.f32 %v1663_v1, %v1086_v58  ;;  %v1624_v5 = vpop.f32.mrb[12].mxu0 }
 0x11b   : > { %v1625_v6 = vpop.f32.mrb[13].mxu0  ;;  %v1664_v30 = vpop.f32.mrb[12].mxu1 }
 0x11c   : > { %v1626_v7 = vadd.f32 %v1625_v6, %v1624_v5  ;;  %v1627_v8 = vpop.f32.mrb[14].mxu0  ;;  %v1665_v54 = vpop.f32.mrb[13].mxu1 }
 0x11d   : > { %v1628_v3 = vpop.f32.mrb[15].mxu0  ;;  %v1666_v10 = vadd.f32 %v1665_v54, %v1664_v30  ;;  %v1667_v11 = vpop.f32.mrb[14].mxu1 }
 0x11e   : > { %v1091_v9 = vadd.f32 %v1626_v7, %v1511_v18  ;;  %v1629_v25 = vadd.f32 %v1628_v3, %v1627_v8  ;;  %v1668_v13 = vpop.f32.mrb[15].mxu1 }
 0x11f   : > { %v1669_v15 = vadd.f32 %v1668_v13, %v1667_v11 }
 0x120   : > { %v1094_v12 = vadd.f32 %v1629_v25, %v1511_v18  ;;  %v2445_v14 = vadd.f32 %v1666_v10, %v1091_v9 }
 0x122   : > { %v2447_v16 = vadd.f32 %v1669_v15, %v1094_v12  ;;  %v1686_v20 = vpop.f32.mrb[16].mxu0 }
 0x123   : > { %v1726_v17 = vpop.f32.mrb[16].mxu1  ;;  %v1687_v22 = vpop.f32.mrb[17].mxu0 }
 0x124   : > { %v1727_v33 = vpop.f32.mrb[17].mxu1  ;;  %v1688_v26 = vadd.f32 %v1687_v22, %v1686_v20  ;;  %v1689_v27 = vpop.f32.mrb[18].mxu0 }
 0x125   : > { %v1728_v60 = vadd.f32 %v1727_v33, %v1726_v17  ;;  %v1729_v19 = vpop.f32.mrb[18].mxu1  ;;  %v1690_v28 = vpop.f32.mrb[19].mxu0 }
 0x126   : > { %v1730_v21 = vpop.f32.mrb[19].mxu1  ;;  %v1197_v29 = vadd.f32 %v1688_v26, %v1132_v31  ;;  %v1691_v62 = vadd.f32 %v1690_v28, %v1689_v27 }
 0x127   : > { %v1731_v23 = vadd.f32 %v1730_v21, %v1729_v19 }
 0x128   : > { %v1200_v34 = vadd.f32 %v1691_v62, %v2439_v32  ;;  %v2450_v36 = vadd.f32 %v1728_v60, %v1197_v29 }
 0x12a   : > { %v1692_v55 = vpop.f32.mrb[20].mxu0  ;;  %v2452_v2 = vadd.f32 %v1731_v23, %v1200_v34 }
 0x12b   : > { %v1732_v18 = vpop.f32.mrb[20].mxu1  ;;  %v1693_v61 = vpop.f32.mrb[21].mxu0 }
 0x12c   : > { %v1733_v35 = vpop.f32.mrb[21].mxu1  ;;  %v1694_v40 = vadd.f32 %v1693_v61, %v1692_v55  ;;  %v1695_v41 = vpop.f32.mrb[22].mxu0 }
 0x12d   : > { %v1734_v37 = vadd.f32 %v1733_v35, %v1732_v18  ;;  %v1735_v39 = vpop.f32.mrb[22].mxu1  ;;  %v1696_v42 = vpop.f32.mrb[23].mxu0 }
 0x12e   : > { %v1736_v38 = vpop.f32.mrb[23].mxu1  ;;  %v1205_v44 = vadd.f32 %v1694_v40, %v1140_v43  ;;  %v1697_v31 = vadd.f32 %v1696_v42, %v1695_v41 }
 0x12f   : > { %v1737_v24 = vadd.f32 %v1736_v38, %v1735_v39 }
 0x130   : > { %v1208_v47 = vadd.f32 %v1697_v31, %v2441_v45  ;;  %v1270_v48 = vadd.f32 %v1734_v37, %v1205_v44 }
 0x132   : > { %v1698_v51 = vpop.f32.mrb[24].mxu0  ;;  %v1273_v53 = vadd.f32 %v1737_v24, %v1208_v47 }
 0x133   : > { %v1738_v46 = vpop.f32.mrb[24].mxu1  ;;  %v1699_v63 = vpop.f32.mrb[25].mxu0 }
 0x134   : > { %v1739_v32 = vpop.f32.mrb[25].mxu1  ;;  %v1700_v57 = vadd.f32 %v1699_v63, %v1698_v51  ;;  %v1701_v58 = vpop.f32.mrb[26].mxu0 }
 0x135   : > { %v1740_v49 = vadd.f32 %v1739_v32, %v1738_v46  ;;  %v1741_v50 = vpop.f32.mrb[26].mxu1  ;;  %v1702_v59 = vpop.f32.mrb[27].mxu0 }
 0x136   : > { %v1742_v52 = vpop.f32.mrb[27].mxu1  ;;  %v1213_v1 = vadd.f32 %v1700_v57, %v1148_v0  ;;  %v1703_v5 = vadd.f32 %v1702_v59, %v1701_v58 }
 0x137   : > { %v1743_v56 = vadd.f32 %v1742_v52, %v1741_v50 }
 0x138   : > { %v1216_v6 = vadd.f32 %v1703_v5, %v2443_v4  ;;  %v1278_v7 = vadd.f32 %v1740_v49, %v1213_v1 }
 0x13a   : > { %v1704_v30 = vpop.f32.mrb[28].mxu0  ;;  %v1281_v25 = vadd.f32 %v1743_v56, %v1216_v6 }
 0x13b   : > { %v1744_v43 = vpop.f32.mrb[28].mxu1  ;;  %v1705_v54 = vpop.f32.mrb[29].mxu0 }
 0x13c   : > { %v1745_v45 = vpop.f32.mrb[29].mxu1  ;;  %v1706_v11 = vadd.f32 %v1705_v54, %v1704_v30  ;;  %v1707_v12 = vpop.f32.mrb[30].mxu0 }
 0x13d   : > { %v1746_v8 = vadd.f32 %v1745_v45, %v1744_v43  ;;  %v1747_v3 = vpop.f32.mrb[30].mxu1  ;;  %v1708_v13 = vpop.f32.mrb[31].mxu0 }
 0x13e   : > { %v1748_v9 = vpop.f32.mrb[31].mxu1  ;;  %v1221_v0 = vadd.f32 %v1706_v11, %v2445_v14  ;;  %v1709_v15 = vadd.f32 %v1708_v13, %v1707_v12 }
 0x13f   : > { %v1749_v10 = vadd.f32 %v1748_v9, %v1747_v3 }
 0x140   : > { %v1224_v4 = vadd.f32 %v1709_v15, %v2447_v16  ;;  %v1286_v17 = vadd.f32 %v1746_v8, %v1221_v0 }
 0x142   : > { %v1780_v19 = vpop.f32.mrb[32].mxu0  ;;  %v1289_v22 = vadd.f32 %v1749_v10, %v1224_v4 }
 0x143   : > { %v1784_v33 = vpop.f32.mrb[32].mxu1  ;;  %v1335_v26 = vadd.f32 %v1780_v19, %v1270_v48  ;;  %v1326_v27 = vpop.f32.mrb[33].mxu0 }
 0x144   : > { %v1342_v60 = vpop.f32.mrb[33].mxu1  ;;  %v1351_v20 = vadd.f32 %v1784_v33, %v1286_v17  ;;  %v1327_v14 = vadd.f32 %v1326_v27, %v2450_v36  ;;  %v1781_v16 = vpop.f32.mrb[34].mxu0 }
 0x145   : > { %v1343_v21 = vadd.f32 %v1342_v60, %v1278_v7  ;;  %v1785_v23 = vpop.f32.mrb[34].mxu1  ;;  %1359 = vst [vmem:[%s163_s10 + $0x10] sm:$0xff] %v1335_v26  ;;  %v1338_v18 = vadd.f32 %v1781_v16, %v1273_v53  ;;  %v1329_v34 = vpop.f32.mrb[35].mxu0 }
 0x146   : > { %v1345_v28 = vpop.f32.mrb[35].mxu1  ;;  %1363 = vst [vmem:[%s163_s10 + $0x30] sm:$0xff] %v1351_v20  ;;  %v1354_v29 = vadd.f32 %v1785_v23, %v1289_v22  ;;  %1357 = vst [vmem:[%s163_s10] sm:$0xff] %v1327_v14  ;;  %v1330_v35 = vadd.f32 %v1329_v34, %v2452_v2 }
 0x147   : > { %1361 = vst [vmem:[%s163_s10 + $0x20] sm:$0xff] %v1343_v21  ;;  %v1346_v62 = vadd.f32 %v1345_v28, %v1281_v25  ;;  %1360 = vst [vmem:[%s163_s10 + $0x18] sm:$0xff] %v1338_v18 }
 0x148   : > { %1364 = vst [vmem:[%s163_s10 + $0x38] sm:$0xff] %v1354_v29  ;;  %1358 = vst [vmem:[%s163_s10 + $0x8] sm:$0xff] %v1330_v35 }
 0x149   : > { %1362 = vst [vmem:[%s163_s10 + $0x28] sm:$0xff] %v1346_v62 }
 0x14a   : > { %1929 = shalt.err (!%p1926_p3)
}
 0x14b   : > { %s1930_s29 = scalar_lea.hbm %s2466_s16, 1024  ;;  %s1934_s5 = scalar_lea.hbm %s2517_s3, 2048 }
 0x14c   : > { %p1931_p4 = scmp.ne.s32.totalorder %s2466_s16, %s1930_s29  ;;  %p1935_p9 = scmp.lt.u32.totalorder %s2466_s16, %s2517_s3 }
 0x14d   : > { %p1936_p10 = scmp.lt.u32.totalorder %s1934_s5, %s1930_s29  ;;  %p1938_p12 = scmp.lt.u32.totalorder %s1930_s29, %s2466_s16 }
 0x14e   : > { %p1932_p7 = pnand %p1931_p4, %p2041_p5 }
 0x14f   : > { %p1937_p11 = por %p1936_p10, %p1935_p9 }
 0x150   : > { %p1933_p8 = pneg %p1932_p7 }
 0x151   : > { %p1939_p13 = por %p1938_p12, %p1937_p11 }
 0x153   : > { %p1940_p0 = pnand %p1939_p13, %p1933_p8 }
 0x155   : > { %1943 = shalt.err (!%p1940_p0)
}
 0x156   : > { %s1981_s7 = smov 128   ;;  %s1982_s8 = smov 8  }
 0x157   : > { %1803 = dma.vmem_to_hbm [thread:$0]  (%p2041_p5), %s2468_s17, 1024, %s2466_s16, %s2473_s24, %s1981_s7, %s1981_s7, %s1982_s8  }
 0x158 PF: > { %p1809_p1 = scmp.ge.s32.totalorder %s1978_s15, 2  ;;  %s1394_s9 = sand.u32 1, %s1966_s12  }
 0x159   : > { %s1395_s10 = scalar_lea.sflag [#allocation3], %s1394_s9 }
 0x15a   : > { %p1806_p2 = pnand %p1809_p1, %p2045_p6 }
 0x15c   : > { %1961 = dma.done.wait (!%p1806_p2), %s1395_s10, 1024  }
 0x15d   : > { %1963 = vsyncadd (!%p1806_p2), %s1395_s10, 4294966272  ;;  %p13_p3 = scmp.ge.s32.totalorder %s2028_s18, 4   ;;  %s2520_s12 = smov %s1970_s13 }
 0x15e   : > { %s2521_s13 = smov %s1974_s14  ;;  %s2522_s14 = smov %s2039_s21 }
 0x15f   : > { %s2523_s15 = smov %s2028_s18  ;;  %15 = sbr.rel (!%p13_p3) target bundleno = 3 (0x3), region = 69 }
 0x166   :  { %1400 = vsyncpa [#allocation3], 1 }
 0x167   :  { %1402 = vsyncpa [#allocation3 + $0x1], 1 }

</bundles_post_ra>
